<compile_context>
chip_gen: v5e
topology: v5e:2x2
jax: 0.10.0
libtpu: 0.0.40
codegen_flags: <defaults>
</compile_context>

<pallas_src>
import numpy as np
import jax
import jax.numpy as jnp
from jax import lax
from jax.experimental import pallas as pl
from jax.experimental.pallas import tpu as pltpu

_F32 = jnp.float32
_BF16 = jnp.bfloat16

# ----------------------------- sizes (small, self-consistent) -----------------------------
H_NUM      = 4     # number of humans (spatial edges)
H_PAD      = 8     # humans padded to one full sublane group
ROBOT_FEAT = 7     # robot_node feature size
EDGE_FEAT  = 2     # temporal / spatial edge feature size
EMB        = 32    # embedding sizes
R_EDGE     = 32    # human-human edge GRU hidden size
R_NODE     = 32    # human node GRU hidden size
ATTN       = 32    # attention size
OUT        = 32    # human_node_output_size == base.output_size
ACT_DIM    = 2     # Box action space -> DiagGaussian with 2 outputs

LANES   = 128      # data / output slab width
W_LANES = 256      # weight / bias slab width (fused edge-GRU gates are 192 lanes wide)

EROWS     = H_PAD + 1          # fused edge block: rows 0..7 spatial humans, row 8 temporal
DATA_ROWS = 16
OUT_ROWS  = 16
E2        = 2 * R_EDGE         # fused edge hidden width (temporal | spatial)

# ----------------------- static weight-slab layout: name -> (row, col, k, n) ----------------
# bf16 slab (W_ROWS, 256); all row offsets multiples of 16 (bf16 sublane packing),
# all lane offsets either 0 / 64 / 128 / 192 (no unaligned lane-tile crossings).
_WOFF = {
    "we_i":     (0,   0,   64, 3 * E2),   # fused edge GRU input weights  (blockdiag t/s per gate)
    "w_ac1":    (0,   192, 32, 2 * OUT),  # [w_a1 | w_c1]
    "w_out":    (32,  192, 32, OUT),
    "we_h":     (64,  0,   64, 3 * E2),   # fused edge GRU hidden weights
    "w_f":      (64,  192, 64, ACT_DIM + 1),   # [w_m on actor | w_cl on critic]
    "w_attn":   (128, 0,   64, 2 * ATTN),      # blockdiag(w_at, w_as)
    "w_nodein": (128, 64,  64, 2 * EMB),       # blockdiag(w_enc, w_eae)
    "wn_i":     (128, 128, 64, 3 * R_NODE),    # node GRU input weights (gate-fused)
    "w_ac2":    (192, 0,   64, 2 * OUT),       # blockdiag(w_a2, w_c2)
    "w_ee":     (192, 64,  16, 2 * EMB),       # blockdiag(w_te, w_se), k padded 4 -> 16
    "w_rl":     (208, 64,  16, 2 * EMB),       # robot_linear, k padded 9 -> 16, out padded 32 -> 64
    "wn_h":     (192, 128, 32, 3 * R_NODE),    # node GRU hidden weights
}
W_ROWS = 256

# bias slab (f32, one bias per row at lane 0): name -> (row, width)
_BOFF = {
    "b_rl":     (0, 2 * EMB),
    "b_ee":     (1, 2 * EMB),
    "bi_e":     (2, 3 * E2),      # [b_ir+b_hr | b_iz+b_hz | b_in] (t|s halves per gate)
    "bhn_e":    (3, E2),          # [bt_hn | bs_hn]
    "b_attn":   (4, 2 * ATTN),    # [b_at | b_as]
    "b_nodein": (5, 2 * EMB),     # [b_enc | b_eae]
    "bi_n":     (6, 3 * R_NODE),
    "bhn_n":    (7, R_NODE),
    "b_out":    (8, OUT),
    "b_ac1":    (9, 2 * OUT),
    "b_ac2":    (10, 2 * OUT),
    "b_f":      (11, ACT_DIM + 1),
}
B_ROWS = 16


# --------------------------------------- kernel -------------------------------------------
def _srnn_policy_kernel(data_ref, w_ref, b_ref, out_ref):
    def W(name):
        r, c, k, n = _WOFF[name]
        return w_ref[r:r + k, c:c + n]

    def B(name):
        r, n = _BOFF[name]
        return b_ref[r:r + 1, 0:n]

    def mm(x, wname):
        # bf16 x bf16 MXU matmul, f32 accumulate.
        return jnp.dot(x.astype(_BF16), W(wname), preferred_element_type=_F32)

    def lin(x, wname, bname):
        return mm(x, wname) + B(bname)

    def relu(x):
        return jnp.maximum(x, 0.0)

    def sig(x):
        # sigmoid via tanh -> EUP slot (no full-precision VPU divide on the serial chain)
        return 0.5 * (jnp.tanh(0.5 * x) + 1.0)

    # ---------------- inputs (hidden states pre-multiplied by masks in the wrapper) ---------
    x_e  = data_ref[0:EROWS, 0:16]               # (9,16) edge-encoder input (t lanes 0:2, s lanes 2:4)
    h_e0 = data_ref[0:EROWS, 64:128]             # (9,64) fused edge hidden  (t lanes 0:32, s 32:64)
    rt   = data_ref[EROWS:EROWS + 1, 0:16]       # (1,16) [temporal | robot | 0-pad]
    h_n0 = data_ref[EROWS:EROWS + 1, 64:64 + R_NODE]   # (1,32) node hidden

    # robot_linear(cat(temporal_edges, robot_node)) + ReLU; output padded to 64 lanes
    # (lanes 32:64 are exactly zero: zero weights/bias + relu)
    robot_states = relu(lin(rt, "w_rl", "b_rl"))                         # (1,64)

    # ------------------ fused temporal+spatial edge RNN (block-diagonal GRU) ---------------
    emb = relu(lin(x_e, "w_ee", "b_ee"))                                 # (9,64)
    gi = lin(emb, "we_i", "bi_e")                                        # (9,192)
    gh = mm(h_e0, "we_h")                                                # (9,192)
    r = sig(gi[:, 0:E2] + gh[:, 0:E2])
    z = sig(gi[:, E2:2 * E2] + gh[:, E2:2 * E2])
    n = jnp.tanh(gi[:, 2 * E2:3 * E2] + r * (gh[:, 2 * E2:3 * E2] + B("bhn_e")))
    h_e = (1.0 - z) * n + z * h_e0                                       # (9,64)

    # ------------------ EdgeAttention_M ------------------------------
    a_emb = lin(h_e, "w_attn", "b_attn")                                 # (9,64)
    t_emb = a_emb[EROWS - 1:EROWS, 0:ATTN]                               # (1,32)
    s_emb = a_emb[0:H_PAD, ATTN:2 * ATTN]                                # (8,32)
    logits = lax.dot_general(t_emb, s_emb, (((1,), (1,)), ((), ())),
                             preferred_element_type=_F32)                # (1,8)
    logits = logits * (H_NUM / float(np.sqrt(ATTN)))                     # temperature = num_edges/sqrt(attn)
    hid = lax.broadcasted_iota(jnp.int32, (1, H_PAD), 1)
    logits = jnp.where(hid < H_NUM, logits, -1e30)                       # mask padded humans
    m = jnp.max(logits, axis=-1, keepdims=True)
    e = jnp.exp(logits - m)
    attn = e * pl.reciprocal(jnp.sum(e, axis=-1, keepdims=True), approx=True)
    weighted = jnp.dot(attn, h_e[0:H_PAD, :], preferred_element_type=_F32)   # (1,64); lanes 32:64 = context

    # ------------------ node RNN (EndRNN), fused input path ----------------------------
    lane64 = lax.broadcasted_iota(jnp.int32, (1, 2 * EMB), 1)
    node_in = robot_states + jnp.where(lane64 >= EMB, weighted, 0.0)     # (1,64) = [robot_states | context]
    enc = relu(lin(node_in, "w_nodein", "b_nodein"))                     # (1,64) = [enc_r | edge_emb]
    gi_n = lin(enc, "wn_i", "bi_n")                                      # (1,96)
    gh_n = mm(h_n0, "wn_h")                                              # (1,96)
    H = R_NODE
    rn = sig(gi_n[:, 0:H] + gh_n[:, 0:H])
    zn = sig(gi_n[:, H:2 * H] + gh_n[:, H:2 * H])
    nn = jnp.tanh(gi_n[:, 2 * H:3 * H] + rn * (gh_n[:, 2 * H:3 * H] + B("bhn_n")))
    h_n = (1.0 - zn) * nn + zn * h_n0                                    # (1,32)
    x = lin(h_n, "w_out", "b_out")                                       # (1,32) == outputs[:,:,0,:]

    # ------------------ fused actor / critic heads --------------------
    h1   = jnp.tanh(lin(x, "w_ac1", "b_ac1"))                            # (1,64) [actor|critic]
    h2   = jnp.tanh(lin(h1, "w_ac2", "b_ac2"))                           # (1,64)
    head = lin(h2, "w_f", "b_f")                                         # (1,3) = [mean_x, mean_y, value]

    # ------------------ packed output (no full-tile clear; only written rows are read) -----
    out_ref[0:EROWS, 0:E2]                       = h_e
    out_ref[EROWS:EROWS + 1, 0:ACT_DIM + 1]      = head
    out_ref[EROWS + 1:EROWS + 2, 0:R_NODE]       = h_n


def _vmem():
    return pl.BlockSpec(memory_space=pltpu.MemorySpace.VMEM)


_srnn_forward = pl.pallas_call(
    _srnn_policy_kernel,
    out_shape=jax.ShapeDtypeStruct((OUT_ROWS, LANES), _F32),
    in_specs=[_vmem(), _vmem(), _vmem()],
    out_specs=_vmem(),
)


# --------------------------------- parameter init / packing --------------------------------
def init_params(key):
    """Random init in PyTorch layout, packed into a (256,256) bf16 weight slab + (16,256) f32 bias slab."""
    def rnd(k, shape):
        return 0.1 * np.asarray(jax.random.normal(k, shape, dtype=_F32))

    keys = iter(jax.random.split(key, 20))
    raw = {
        "w_rl":  rnd(next(keys), (EDGE_FEAT + ROBOT_FEAT, EMB)),
        "w_te":  rnd(next(keys), (EDGE_FEAT, EMB)),
        "w_se":  rnd(next(keys), (EDGE_FEAT, EMB)),
        # GRU weights in (in, 3*hidden) layout, PyTorch gate order [r|z|n]
        "wih_t": rnd(next(keys), (EMB, 3 * R_EDGE)),     "whh_t": rnd(next(keys), (R_EDGE, 3 * R_EDGE)),
        "wih_s": rnd(next(keys), (EMB, 3 * R_EDGE)),     "whh_s": rnd(next(keys), (R_EDGE, 3 * R_EDGE)),
        "wih_n": rnd(next(keys), (2 * EMB, 3 * R_NODE)), "whh_n": rnd(next(keys), (R_NODE, 3 * R_NODE)),
        "w_at":  rnd(next(keys), (R_EDGE, ATTN)),  "w_as": rnd(next(keys), (R_EDGE, ATTN)),
        "w_enc": rnd(next(keys), (EMB, EMB)),      "w_eae": rnd(next(keys), (R_EDGE, EMB)),
        "w_out": rnd(next(keys), (R_NODE, OUT)),
        "w_a1":  rnd(next(keys), (OUT, OUT)), "w_a2": rnd(next(keys), (OUT, OUT)),
        "w_c1":  rnd(next(keys), (OUT, OUT)), "w_c2": rnd(next(keys), (OUT, OUT)),
        "w_cl":  rnd(next(keys), (OUT, 1)),   "w_m":  rnd(next(keys), (OUT, ACT_DIM)),
    }

    H = R_EDGE
    def gates(w):  # (in, 3H) -> r, z, n blocks
        return w[:, 0:H], w[:, H:2 * H], w[:, 2 * H:3 * H]

    wmats = {}
    # robot_linear: contraction padded 9 -> 16, output padded 32 -> 64 (upper lanes stay zero)
    w_rl = np.zeros((16, 2 * EMB), np.float32)
    w_rl[:EDGE_FEAT + ROBOT_FEAT, 0:EMB] = raw["w_rl"]
    wmats["w_rl"] = w_rl
    # edge encoder blockdiag(w_te, w_se): input lanes 0:2 temporal, 2:4 spatial
    w_ee = np.zeros((16, 2 * EMB), np.float32)
    w_ee[0:EDGE_FEAT, 0:EMB] = raw["w_te"]
    w_ee[EDGE_FEAT:2 * EDGE_FEAT, EMB:2 * EMB] = raw["w_se"]
    wmats["w_ee"] = w_ee
    # fused edge GRU (blockdiag temporal/spatial inside each gate, gates [r|z|n] at lanes 0/64/128)
    we_i = np.zeros((E2, 3 * E2), np.float32)
    we_h = np.zeros((E2, 3 * E2), np.float32)
    t_i, s_i = gates(raw["wih_t"]), gates(raw["wih_s"])
    t_h, s_h = gates(raw["whh_t"]), gates(raw["whh_s"])
    for g in range(3):
        we_i[0:R_EDGE,        g * E2:g * E2 + R_EDGE]       = t_i[g]
        we_i[R_EDGE:2 * R_EDGE, g * E2 + R_EDGE:(g + 1) * E2] = s_i[g]
        we_h[0:R_EDGE,        g * E2:g * E2 + R_EDGE]       = t_h[g]
        we_h[R_EDGE:2 * R_EDGE, g * E2 + R_EDGE:(g + 1) * E2] = s_h[g]
    wmats["we_i"], wmats["we_h"] = we_i, we_h
    # attention / node-input blockdiags
    w_attn = np.zeros((E2, 2 * ATTN), np.float32)
    w_attn[0:R_EDGE, 0:ATTN] = raw["w_at"]; w_attn[R_EDGE:, ATTN:] = raw["w_as"]
    wmats["w_attn"] = w_attn
    w_nodein = np.zeros((2 * EMB, 2 * EMB), np.float32)
    w_nodein[0:EMB, 0:EMB] = raw["w_enc"]; w_nodein[EMB:, EMB:] = raw["w_eae"]
    wmats["w_nodein"] = w_nodein
    # node GRU: PyTorch layout already matches (input = cat(enc_r, edge_emb), gates [r|z|n])
    wmats["wn_i"] = raw["wih_n"]
    wmats["wn_h"] = raw["whh_n"]
    wmats["w_out"] = raw["w_out"]
    # fused heads
    wmats["w_ac1"] = np.concatenate([raw["w_a1"], raw["w_c1"]], axis=1)     # (32, 64)
    ac2 = np.zeros((2 * OUT, 2 * OUT), np.float32)
    ac2[:OUT, :OUT] = raw["w_a2"]; ac2[OUT:, OUT:] = raw["w_c2"]
    wmats["w_ac2"] = ac2
    wf = np.zeros((2 * OUT, ACT_DIM + 1), np.float32)
    wf[:OUT, 0:ACT_DIM] = raw["w_m"]; wf[OUT:, ACT_DIM:ACT_DIM + 1] = raw["w_cl"]
    wmats["w_f"] = wf

    # biases are zero here (matches previous init). For trained PyTorch weights use:
    #   bi_e gate g: lanes [g*64:g*64+32] = bt_i{g} (+ bt_h{g} for r,z), lanes [+32:+64] = spatial;
    #   bhn_e = [bt_hn | bs_hn]; bi_n/bhn_n analogous; b_ee=[b_te|b_se]; b_attn=[b_at|b_as];
    #   b_nodein=[b_enc|b_eae]; b_ac1=[b_a1|b_c1]; b_ac2=[b_a2|b_c2]; b_f=[b_m, b_cl].
    bvecs = {name: np.zeros((n,), np.float32) for name, (_row, n) in _BOFF.items()}

    w_slab = np.zeros((W_ROWS, W_LANES), np.float32)
    for name, (r, c, k, n) in _WOFF.items():
        w_slab[r:r + k, c:c + n] = wmats[name]
    b_slab = np.zeros((B_ROWS, W_LANES), np.float32)
    for name, (row, n) in _BOFF.items():
        b_slab[row, 0:n] = bvecs[name]
    return jnp.asarray(w_slab, _BF16), jnp.asarray(b_slab, _F32)


# ----------------------------- jitted device-side forward ---------------------------------
@jax.jit
def _policy_forward(robot_node, temporal_edges, spatial_edges, masks,
                    h_node, h_edge, w_slab, b_slab):
    robot    = robot_node.reshape(1, ROBOT_FEAT).astype(_F32)
    temporal = temporal_edges.reshape(1, EDGE_FEAT).astype(_F32)
    spatial  = spatial_edges.reshape(H_NUM, EDGE_FEAT).astype(_F32)
    mask     = masks.reshape(1, 1).astype(_F32)
    h_node   = h_node.reshape(1, R_NODE).astype(_F32) * mask            # h * masks (SRNN GRU step)
    h_edge   = h_edge.reshape(1 + H_NUM, R_EDGE).astype(_F32) * mask    # row0 = temporal, rows1: = spatial

    data = jnp.zeros((DATA_ROWS, LANES), _F32)
    # fused edge block rows 0..7 = spatial humans (padded), row 8 = temporal
    data = data.at[0:H_NUM, EDGE_FEAT:2 * EDGE_FEAT].set(spatial)                 # spatial feats, lanes 2:4
    data = data.at[H_PAD, 0:EDGE_FEAT].set(temporal[0])                           # temporal feats, lanes 0:2
    data = data.at[0:H_NUM, 64 + R_EDGE:64 + 2 * R_EDGE].set(h_edge[1:])          # h_spatial, lanes 96:128
    data = data.at[H_PAD, 64:64 + R_EDGE].set(h_edge[0])                          # h_temporal, lanes 64:96
    # row 9: robot_linear input + node hidden
    data = data.at[EROWS, 0:EDGE_FEAT].set(temporal[0])
    data = data.at[EROWS, EDGE_FEAT:EDGE_FEAT + ROBOT_FEAT].set(robot[0])
    data = data.at[EROWS, 64:64 + R_NODE].set(h_node[0])

    out = _srnn_forward(data, w_slab, b_slab)

    mean       = out[EROWS:EROWS + 1, 0:ACT_DIM]                                  # (1, 2)
    value      = out[EROWS:EROWS + 1, ACT_DIM:ACT_DIM + 1]                        # (1, 1)
    h_node_new = out[EROWS + 1:EROWS + 2, 0:R_NODE].reshape(1, 1, R_NODE)
    h_t_new    = out[H_PAD:H_PAD + 1, 0:R_EDGE]                                   # temporal half, row 8
    h_s_new    = out[0:H_NUM, R_EDGE:2 * R_EDGE]                                  # spatial half, rows 0:4
    h_edge_new = jnp.concatenate([h_t_new, h_s_new], axis=0).reshape(1, 1 + H_NUM, R_EDGE)
    return value, mean, h_node_new, h_edge_new


# ------------------------------------- Policy wrapper --------------------------------------
class PallasPolicy:
    """JAX/Pallas equivalent of Policy(base='srnn', action_space=Box(2)).act(...)."""

    def __init__(self, key, action_dim=ACT_DIM):
        self.w_slab, self.b_slab = init_params(key)
        self.logstd = np.zeros((1, action_dim), np.float32)   # DiagGaussian AddBias(zeros)

    def act(self, inputs, rnn_hxs, masks, deterministic=False, rng_seed=0):
        value, mean, h_node_new, h_edge_new = _policy_forward(
            jnp.asarray(inputs['robot_node'], _F32),
            jnp.asarray(inputs['temporal_edges'], _F32),
            jnp.asarray(inputs['spatial_edges'], _F32),
            jnp.asarray(masks, _F32),
            jnp.asarray(rnn_hxs['human_node_rnn'], _F32),
            jnp.asarray(rnn_hxs['human_human_edge_rnn'], _F32),
            self.w_slab, self.b_slab)

        new_rnn_hxs = {
            'human_node_rnn':       h_node_new,     # h_nodes
            'human_human_edge_rnn': h_edge_new,     # cat(hidden_temporal, hidden_spatial)
        }

        # ------------- safety shield (host-side numpy, as in the reference act()) -------------
        # TODO(synk): data-dependent while-loop with prints and dist.sample() RNG has no clean
        # Pallas equivalent; it stays on the host exactly as in the PyTorch reference.
        mean_np = np.asarray(mean)                  # single device->host pull of the action mean
        std_np  = np.exp(self.logstd)
        spatial_np = np.asarray(inputs['spatial_edges'])
        robot_pos  = np.asarray(inputs['robot_node'])[0, 0, 0:2]
        human_rad, human_vmax, dt, k = 0.3, 1.0, 0.25, 1
        rng = np.random.default_rng(rng_seed)       # deterministic stand-in for dist.sample()
        action = mean_np.copy()                     # dist.mode() == mean for DiagGaussian
        for ag in range(spatial_np.shape[1]):
            counter = 0
            human_pos = spatial_np[0, ag, 0:2] + robot_pos
            while counter < 10:
                fut_pos = robot_pos + action * dt * k
                distance = np.linalg.norm(fut_pos - human_pos)
                if distance < human_rad + human_vmax * dt:
                    print('action is unsafe!')
                    action = mean_np + std_np * rng.standard_normal(mean_np.shape).astype(np.float32)
                else:
                    break
                counter += 1
                print('Counter threshold reached!') if counter == 10 else None

        # ------------- DiagGaussian log_probs (trivial elementwise glue, host-side) -----------
        var = std_np * std_np
        logp = (-((action - mean_np) ** 2) / (2.0 * var)
                - self.logstd - np.log(np.sqrt(2.0 * np.pi)))
        action_log_probs = jnp.asarray(logp.sum(axis=-1, keepdims=True), _F32)
        action = jnp.asarray(action, _F32)
        return value, action, action_log_probs, new_rnn_hxs


# ---------------------------------------- demo --------------------------------------------
if __name__ == "__main__":
    key = jax.random.PRNGKey(0)
    pkey, ikey = jax.random.split(key)
    policy = PallasPolicy(pkey)

    k1, k2, k3 = jax.random.split(ikey, 3)
    inputs = {
        'robot_node':     jax.random.normal(k1, (1, 1, ROBOT_FEAT), dtype=_F32),
        'temporal_edges': jax.random.normal(k2, (1, 1, EDGE_FEAT), dtype=_F32),
        # offset so humans are not right on top of the robot (keeps the shield loop silent)
        'spatial_edges':  jax.random.normal(k3, (1, H_NUM, EDGE_FEAT), dtype=_F32) + 3.0,
    }
    rnn_hxs = {
        'human_node_rnn':       jnp.zeros((1, 1, R_NODE), _F32),
        'human_human_edge_rnn': jnp.zeros((1, 1 + H_NUM, R_EDGE), _F32),
    }
    masks = jnp.ones((1, 1), _F32)

    value, action, action_log_probs, new_hxs = policy.act(inputs, rnn_hxs, masks)
    jax.block_until_ready((value, action, action_log_probs,
                           new_hxs['human_node_rnn'], new_hxs['human_human_edge_rnn']))
    print("KERNEL_OK")
</pallas_src>

<mosaic_0001>
module attributes {stable_mosaic.version = 11 : i64} {
  func.func @_srnn_policy_kernel(%arg0: memref<16x128xf32, #tpu.memory_space<vmem>>, %arg1: memref<256x256xbf16, #tpu.memory_space<vmem>>, %arg2: memref<16x256xf32, #tpu.memory_space<vmem>>, %arg3: memref<16x128xf32, #tpu.memory_space<vmem>>) attributes {dimension_semantics = [], scalar_prefetch = 0 : i64, scratch_operands = 0 : i64, tpu.core_type = #tpu.core_type<tc>} {
    %c0 = arith.constant 0 : index
    %c0_0 = arith.constant 0 : index
    %0 = vector.load %arg0[%c0, %c0_0] : memref<16x128xf32, #tpu.memory_space<vmem>>, vector<9x16xf32>
    %c0_1 = arith.constant 0 : index
    %c64 = arith.constant 64 : index
    %1 = vector.load %arg0[%c0_1, %c64] : memref<16x128xf32, #tpu.memory_space<vmem>>, vector<9x64xf32>
    %c9 = arith.constant 9 : index
    %c0_2 = arith.constant 0 : index
    %2 = vector.load %arg0[%c9, %c0_2] : memref<16x128xf32, #tpu.memory_space<vmem>>, vector<1x16xf32>
    %c9_3 = arith.constant 9 : index
    %c64_4 = arith.constant 64 : index
    %3 = vector.load %arg0[%c9_3, %c64_4] : memref<16x128xf32, #tpu.memory_space<vmem>>, vector<1x32xf32>
    %4 = arith.truncf %2 : vector<1x16xf32> to vector<1x16xbf16>
    %c208 = arith.constant 208 : index
    %c64_5 = arith.constant 64 : index
    %5 = vector.load %arg1[%c208, %c64_5] : memref<256x256xbf16, #tpu.memory_space<vmem>>, vector<16x64xbf16>
    %cst = arith.constant dense<0.000000e+00> : vector<1x64xf32>
    %6 = tpu.matmul %4, %5, %cst {dimension_numbers = #tpu.dot_dimension_numbers<[1], [0], [0], [1], [0, 0, 1, 1], [], []>} : vector<1x16xbf16>, vector<16x64xbf16>, vector<1x64xf32> -> vector<1x64xf32>
    %c0_6 = arith.constant 0 : index
    %c0_7 = arith.constant 0 : index
    %7 = vector.load %arg2[%c0_6, %c0_7] : memref<16x256xf32, #tpu.memory_space<vmem>>, vector<1x64xf32>
    %8 = arith.addf %6, %7 : vector<1x64xf32>
    %cst_8 = arith.constant 0.000000e+00 : f32
    %9 = vector.broadcast %cst_8 : f32 to vector<1x64xf32>
    %10 = arith.maximumf %8, %9 : vector<1x64xf32>
    %11 = arith.truncf %0 : vector<9x16xf32> to vector<9x16xbf16>
    %c192 = arith.constant 192 : index
    %c64_9 = arith.constant 64 : index
    %12 = vector.load %arg1[%c192, %c64_9] : memref<256x256xbf16, #tpu.memory_space<vmem>>, vector<16x64xbf16>
    %cst_10 = arith.constant dense<0.000000e+00> : vector<9x64xf32>
    %13 = tpu.matmul %11, %12, %cst_10 {dimension_numbers = #tpu.dot_dimension_numbers<[1], [0], [0], [1], [0, 0, 1, 1], [], []>} : vector<9x16xbf16>, vector<16x64xbf16>, vector<9x64xf32> -> vector<9x64xf32>
    %c1 = arith.constant 1 : index
    %c0_11 = arith.constant 0 : index
    %14 = vector.load %arg2[%c1, %c0_11] : memref<16x256xf32, #tpu.memory_space<vmem>>, vector<1x64xf32>
    %15 = vector.broadcast %14 : vector<1x64xf32> to vector<9x64xf32>
    %16 = arith.addf %13, %15 : vector<9x64xf32>
    %cst_12 = arith.constant 0.000000e+00 : f32
    %17 = vector.broadcast %cst_12 : f32 to vector<9x64xf32>
    %18 = arith.maximumf %16, %17 : vector<9x64xf32>
    %19 = arith.truncf %18 : vector<9x64xf32> to vector<9x64xbf16>
    %c0_13 = arith.constant 0 : index
    %c0_14 = arith.constant 0 : index
    %20 = vector.load %arg1[%c0_13, %c0_14] : memref<256x256xbf16, #tpu.memory_space<vmem>>, vector<64x192xbf16>
    %cst_15 = arith.constant dense<0.000000e+00> : vector<9x192xf32>
    %21 = tpu.matmul %19, %20, %cst_15 {dimension_numbers = #tpu.dot_dimension_numbers<[1], [0], [0], [1], [0, 0, 1, 1], [], []>} : vector<9x64xbf16>, vector<64x192xbf16>, vector<9x192xf32> -> vector<9x192xf32>
    %c2 = arith.constant 2 : index
    %c0_16 = arith.constant 0 : index
    %22 = vector.load %arg2[%c2, %c0_16] : memref<16x256xf32, #tpu.memory_space<vmem>>, vector<1x192xf32>
    %23 = vector.broadcast %22 : vector<1x192xf32> to vector<9x192xf32>
    %24 = arith.addf %21, %23 : vector<9x192xf32>
    %25 = arith.truncf %1 : vector<9x64xf32> to vector<9x64xbf16>
    %c64_17 = arith.constant 64 : index
    %c0_18 = arith.constant 0 : index
    %26 = vector.load %arg1[%c64_17, %c0_18] : memref<256x256xbf16, #tpu.memory_space<vmem>>, vector<64x192xbf16>
    %cst_19 = arith.constant dense<0.000000e+00> : vector<9x192xf32>
    %27 = tpu.matmul %25, %26, %cst_19 {dimension_numbers = #tpu.dot_dimension_numbers<[1], [0], [0], [1], [0, 0, 1, 1], [], []>} : vector<9x64xbf16>, vector<64x192xbf16>, vector<9x192xf32> -> vector<9x192xf32>
    %28 = vector.extract_strided_slice %24 {offsets = [0, 0], sizes = [9, 64], strides = [1, 1]} : vector<9x192xf32> to vector<9x64xf32>
    %29 = vector.extract_strided_slice %27 {offsets = [0, 0], sizes = [9, 64], strides = [1, 1]} : vector<9x192xf32> to vector<9x64xf32>
    %30 = arith.addf %28, %29 : vector<9x64xf32>
    %cst_20 = arith.constant 5.000000e-01 : f32
    %31 = vector.broadcast %cst_20 : f32 to vector<9x64xf32>
    %32 = arith.mulf %31, %30 : vector<9x64xf32>
    %33 = math.tanh %32 : vector<9x64xf32>
    %cst_21 = arith.constant 1.000000e+00 : f32
    %34 = vector.broadcast %cst_21 : f32 to vector<9x64xf32>
    %35 = arith.addf %33, %34 : vector<9x64xf32>
    %cst_22 = arith.constant 5.000000e-01 : f32
    %36 = vector.broadcast %cst_22 : f32 to vector<9x64xf32>
    %37 = arith.mulf %36, %35 : vector<9x64xf32>
    %38 = vector.extract_strided_slice %24 {offsets = [0, 64], sizes = [9, 64], strides = [1, 1]} : vector<9x192xf32> to vector<9x64xf32>
    %39 = vector.extract_strided_slice %27 {offsets = [0, 64], sizes = [9, 64], strides = [1, 1]} : vector<9x192xf32> to vector<9x64xf32>
    %40 = arith.addf %38, %39 : vector<9x64xf32>
    %cst_23 = arith.constant 5.000000e-01 : f32
    %41 = vector.broadcast %cst_23 : f32 to vector<9x64xf32>
    %42 = arith.mulf %41, %40 : vector<9x64xf32>
    %43 = math.tanh %42 : vector<9x64xf32>
    %cst_24 = arith.constant 1.000000e+00 : f32
    %44 = vector.broadcast %cst_24 : f32 to vector<9x64xf32>
    %45 = arith.addf %43, %44 : vector<9x64xf32>
    %cst_25 = arith.constant 5.000000e-01 : f32
    %46 = vector.broadcast %cst_25 : f32 to vector<9x64xf32>
    %47 = arith.mulf %46, %45 : vector<9x64xf32>
    %48 = vector.extract_strided_slice %24 {offsets = [0, 128], sizes = [9, 64], strides = [1, 1]} : vector<9x192xf32> to vector<9x64xf32>
    %49 = vector.extract_strided_slice %27 {offsets = [0, 128], sizes = [9, 64], strides = [1, 1]} : vector<9x192xf32> to vector<9x64xf32>
    %c3 = arith.constant 3 : index
    %c0_26 = arith.constant 0 : index
    %50 = vector.load %arg2[%c3, %c0_26] : memref<16x256xf32, #tpu.memory_space<vmem>>, vector<1x64xf32>
    %51 = vector.broadcast %50 : vector<1x64xf32> to vector<9x64xf32>
    %52 = arith.addf %49, %51 : vector<9x64xf32>
    %53 = arith.mulf %37, %52 : vector<9x64xf32>
    %54 = arith.addf %48, %53 : vector<9x64xf32>
    %55 = math.tanh %54 : vector<9x64xf32>
    %cst_27 = arith.constant 1.000000e+00 : f32
    %56 = vector.broadcast %cst_27 : f32 to vector<9x64xf32>
    %57 = arith.subf %56, %47 : vector<9x64xf32>
    %58 = arith.mulf %57, %55 : vector<9x64xf32>
    %59 = arith.mulf %47, %1 : vector<9x64xf32>
    %60 = arith.addf %58, %59 : vector<9x64xf32>
    %61 = arith.truncf %60 : vector<9x64xf32> to vector<9x64xbf16>
    %c128 = arith.constant 128 : index
    %c0_28 = arith.constant 0 : index
    %62 = vector.load %arg1[%c128, %c0_28] : memref<256x256xbf16, #tpu.memory_space<vmem>>, vector<64x64xbf16>
    %cst_29 = arith.constant dense<0.000000e+00> : vector<9x64xf32>
    %63 = tpu.matmul %61, %62, %cst_29 {dimension_numbers = #tpu.dot_dimension_numbers<[1], [0], [0], [1], [0, 0, 1, 1], [], []>} : vector<9x64xbf16>, vector<64x64xbf16>, vector<9x64xf32> -> vector<9x64xf32>
    %c4 = arith.constant 4 : index
    %c0_30 = arith.constant 0 : index
    %64 = vector.load %arg2[%c4, %c0_30] : memref<16x256xf32, #tpu.memory_space<vmem>>, vector<1x64xf32>
    %65 = vector.broadcast %64 : vector<1x64xf32> to vector<9x64xf32>
    %66 = arith.addf %63, %65 : vector<9x64xf32>
    %67 = vector.extract_strided_slice %66 {offsets = [8, 0], sizes = [1, 32], strides = [1, 1]} : vector<9x64xf32> to vector<1x32xf32>
    %68 = vector.extract_strided_slice %66 {offsets = [0, 32], sizes = [8, 32], strides = [1, 1]} : vector<9x64xf32> to vector<8x32xf32>
    %cst_31 = arith.constant dense<0.000000e+00> : vector<1x8xf32>
    %69 = tpu.matmul %67, %68, %cst_31 {dimension_numbers = #tpu.dot_dimension_numbers<[1], [1], [0], [0], [0, 0, 1, 0], [], []>} : vector<1x32xf32>, vector<8x32xf32>, vector<1x8xf32> -> vector<1x8xf32>
    %cst_32 = arith.constant 0.707106769 : f32
    %70 = vector.broadcast %cst_32 : f32 to vector<1x8xf32>
    %71 = arith.mulf %69, %70 : vector<1x8xf32>
    %72 = tpu.iota {dimensions = array<i32: 1>} : vector<1x8xi32>
    %c4_i32 = arith.constant 4 : i32
    %73 = vector.broadcast %c4_i32 : i32 to vector<1x8xi32>
    %74 = arith.cmpi slt, %72, %73 : vector<1x8xi32>
    %cst_33 = arith.constant -1.000000e+30 : f32
    %75 = vector.broadcast %cst_33 : f32 to vector<1x8xf32>
    %76 = arith.select %74, %71, %75 : vector<1x8xi1>, vector<1x8xf32>
    %cst_34 = arith.constant dense<0xFF800000> : vector<1xf32>
    %77 = vector.multi_reduction <maximumf>, %76, %cst_34 [1] : vector<1x8xf32> to vector<1xf32>
    %78 = vector.shape_cast %77 : vector<1xf32> to vector<1x1xf32>
    %79 = vector.broadcast %78 : vector<1x1xf32> to vector<1x8xf32>
    %80 = arith.subf %76, %79 : vector<1x8xf32>
    %81 = math.exp %80 : vector<1x8xf32>
    %cst_35 = arith.constant dense<0.000000e+00> : vector<1xf32>
    %82 = vector.multi_reduction <add>, %81, %cst_35 [1] : vector<1x8xf32> to vector<1xf32>
    %83 = vector.shape_cast %82 : vector<1xf32> to vector<1x1xf32>
    %84 = tpu.reciprocal %83 {approx = true} : vector<1x1xf32> -> vector<1x1xf32>
    %85 = vector.broadcast %84 : vector<1x1xf32> to vector<1x8xf32>
    %86 = arith.mulf %81, %85 : vector<1x8xf32>
    %87 = vector.extract_strided_slice %60 {offsets = [0, 0], sizes = [8, 64], strides = [1, 1]} : vector<9x64xf32> to vector<8x64xf32>
    %cst_36 = arith.constant dense<0.000000e+00> : vector<1x64xf32>
    %88 = tpu.matmul %86, %87, %cst_36 {dimension_numbers = #tpu.dot_dimension_numbers<[1], [0], [0], [1], [0, 0, 1, 1], [], []>} : vector<1x8xf32>, vector<8x64xf32>, vector<1x64xf32> -> vector<1x64xf32>
    %89 = tpu.iota {dimensions = array<i32: 1>} : vector<1x64xi32>
    %c32_i32 = arith.constant 32 : i32
    %90 = vector.broadcast %c32_i32 : i32 to vector<1x64xi32>
    %91 = arith.cmpi sge, %89, %90 : vector<1x64xi32>
    %cst_37 = arith.constant 0.000000e+00 : f32
    %92 = vector.broadcast %cst_37 : f32 to vector<1x64xf32>
    %93 = arith.select %91, %88, %92 : vector<1x64xi1>, vector<1x64xf32>
    %94 = arith.addf %10, %93 : vector<1x64xf32>
    %95 = arith.truncf %94 : vector<1x64xf32> to vector<1x64xbf16>
    %c128_38 = arith.constant 128 : index
    %c64_39 = arith.constant 64 : index
    %96 = vector.load %arg1[%c128_38, %c64_39] : memref<256x256xbf16, #tpu.memory_space<vmem>>, vector<64x64xbf16>
    %cst_40 = arith.constant dense<0.000000e+00> : vector<1x64xf32>
    %97 = tpu.matmul %95, %96, %cst_40 {dimension_numbers = #tpu.dot_dimension_numbers<[1], [0], [0], [1], [0, 0, 1, 1], [], []>} : vector<1x64xbf16>, vector<64x64xbf16>, vector<1x64xf32> -> vector<1x64xf32>
    %c5 = arith.constant 5 : index
    %c0_41 = arith.constant 0 : index
    %98 = vector.load %arg2[%c5, %c0_41] : memref<16x256xf32, #tpu.memory_space<vmem>>, vector<1x64xf32>
    %99 = arith.addf %97, %98 : vector<1x64xf32>
    %cst_42 = arith.constant 0.000000e+00 : f32
    %100 = vector.broadcast %cst_42 : f32 to vector<1x64xf32>
    %101 = arith.maximumf %99, %100 : vector<1x64xf32>
    %102 = arith.truncf %101 : vector<1x64xf32> to vector<1x64xbf16>
    %c128_43 = arith.constant 128 : index
    %c128_44 = arith.constant 128 : index
    %103 = vector.load %arg1[%c128_43, %c128_44] : memref<256x256xbf16, #tpu.memory_space<vmem>>, vector<64x96xbf16>
    %cst_45 = arith.constant dense<0.000000e+00> : vector<1x96xf32>
    %104 = tpu.matmul %102, %103, %cst_45 {dimension_numbers = #tpu.dot_dimension_numbers<[1], [0], [0], [1], [0, 0, 1, 1], [], []>} : vector<1x64xbf16>, vector<64x96xbf16>, vector<1x96xf32> -> vector<1x96xf32>
    %c6 = arith.constant 6 : index
    %c0_46 = arith.constant 0 : index
    %105 = vector.load %arg2[%c6, %c0_46] : memref<16x256xf32, #tpu.memory_space<vmem>>, vector<1x96xf32>
    %106 = arith.addf %104, %105 : vector<1x96xf32>
    %107 = arith.truncf %3 : vector<1x32xf32> to vector<1x32xbf16>
    %c192_47 = arith.constant 192 : index
    %c128_48 = arith.constant 128 : index
    %108 = vector.load %arg1[%c192_47, %c128_48] : memref<256x256xbf16, #tpu.memory_space<vmem>>, vector<32x96xbf16>
    %cst_49 = arith.constant dense<0.000000e+00> : vector<1x96xf32>
    %109 = tpu.matmul %107, %108, %cst_49 {dimension_numbers = #tpu.dot_dimension_numbers<[1], [0], [0], [1], [0, 0, 1, 1], [], []>} : vector<1x32xbf16>, vector<32x96xbf16>, vector<1x96xf32> -> vector<1x96xf32>
    %110 = vector.extract_strided_slice %106 {offsets = [0, 0], sizes = [1, 32], strides = [1, 1]} : vector<1x96xf32> to vector<1x32xf32>
    %111 = vector.extract_strided_slice %109 {offsets = [0, 0], sizes = [1, 32], strides = [1, 1]} : vector<1x96xf32> to vector<1x32xf32>
    %112 = arith.addf %110, %111 : vector<1x32xf32>
    %cst_50 = arith.constant 5.000000e-01 : f32
    %113 = vector.broadcast %cst_50 : f32 to vector<1x32xf32>
    %114 = arith.mulf %113, %112 : vector<1x32xf32>
    %115 = math.tanh %114 : vector<1x32xf32>
    %cst_51 = arith.constant 1.000000e+00 : f32
    %116 = vector.broadcast %cst_51 : f32 to vector<1x32xf32>
    %117 = arith.addf %115, %116 : vector<1x32xf32>
    %cst_52 = arith.constant 5.000000e-01 : f32
    %118 = vector.broadcast %cst_52 : f32 to vector<1x32xf32>
    %119 = arith.mulf %118, %117 : vector<1x32xf32>
    %120 = vector.extract_strided_slice %106 {offsets = [0, 32], sizes = [1, 32], strides = [1, 1]} : vector<1x96xf32> to vector<1x32xf32>
    %121 = vector.extract_strided_slice %109 {offsets = [0, 32], sizes = [1, 32], strides = [1, 1]} : vector<1x96xf32> to vector<1x32xf32>
    %122 = arith.addf %120, %121 : vector<1x32xf32>
    %cst_53 = arith.constant 5.000000e-01 : f32
    %123 = vector.broadcast %cst_53 : f32 to vector<1x32xf32>
    %124 = arith.mulf %123, %122 : vector<1x32xf32>
    %125 = math.tanh %124 : vector<1x32xf32>
    %cst_54 = arith.constant 1.000000e+00 : f32
    %126 = vector.broadcast %cst_54 : f32 to vector<1x32xf32>
    %127 = arith.addf %125, %126 : vector<1x32xf32>
    %cst_55 = arith.constant 5.000000e-01 : f32
    %128 = vector.broadcast %cst_55 : f32 to vector<1x32xf32>
    %129 = arith.mulf %128, %127 : vector<1x32xf32>
    %130 = vector.extract_strided_slice %106 {offsets = [0, 64], sizes = [1, 32], strides = [1, 1]} : vector<1x96xf32> to vector<1x32xf32>
    %131 = vector.extract_strided_slice %109 {offsets = [0, 64], sizes = [1, 32], strides = [1, 1]} : vector<1x96xf32> to vector<1x32xf32>
    %c7 = arith.constant 7 : index
    %c0_56 = arith.constant 0 : index
    %132 = vector.load %arg2[%c7, %c0_56] : memref<16x256xf32, #tpu.memory_space<vmem>>, vector<1x32xf32>
    %133 = arith.addf %131, %132 : vector<1x32xf32>
    %134 = arith.mulf %119, %133 : vector<1x32xf32>
    %135 = arith.addf %130, %134 : vector<1x32xf32>
    %136 = math.tanh %135 : vector<1x32xf32>
    %cst_57 = arith.constant 1.000000e+00 : f32
    %137 = vector.broadcast %cst_57 : f32 to vector<1x32xf32>
    %138 = arith.subf %137, %129 : vector<1x32xf32>
    %139 = arith.mulf %138, %136 : vector<1x32xf32>
    %140 = arith.mulf %129, %3 : vector<1x32xf32>
    %141 = arith.addf %139, %140 : vector<1x32xf32>
    %142 = arith.truncf %141 : vector<1x32xf32> to vector<1x32xbf16>
    %c32 = arith.constant 32 : index
    %c192_58 = arith.constant 192 : index
    %143 = vector.load %arg1[%c32, %c192_58] : memref<256x256xbf16, #tpu.memory_space<vmem>>, vector<32x32xbf16>
    %cst_59 = arith.constant dense<0.000000e+00> : vector<1x32xf32>
    %144 = tpu.matmul %142, %143, %cst_59 {dimension_numbers = #tpu.dot_dimension_numbers<[1], [0], [0], [1], [0, 0, 1, 1], [], []>} : vector<1x32xbf16>, vector<32x32xbf16>, vector<1x32xf32> -> vector<1x32xf32>
    %c8 = arith.constant 8 : index
    %c0_60 = arith.constant 0 : index
    %145 = vector.load %arg2[%c8, %c0_60] : memref<16x256xf32, #tpu.memory_space<vmem>>, vector<1x32xf32>
    %146 = arith.addf %144, %145 : vector<1x32xf32>
    %147 = arith.truncf %146 : vector<1x32xf32> to vector<1x32xbf16>
    %c0_61 = arith.constant 0 : index
    %c192_62 = arith.constant 192 : index
    %148 = vector.load %arg1[%c0_61, %c192_62] : memref<256x256xbf16, #tpu.memory_space<vmem>>, vector<32x64xbf16>
    %cst_63 = arith.constant dense<0.000000e+00> : vector<1x64xf32>
    %149 = tpu.matmul %147, %148, %cst_63 {dimension_numbers = #tpu.dot_dimension_numbers<[1], [0], [0], [1], [0, 0, 1, 1], [], []>} : vector<1x32xbf16>, vector<32x64xbf16>, vector<1x64xf32> -> vector<1x64xf32>
    %c9_64 = arith.constant 9 : index
    %c0_65 = arith.constant 0 : index
    %150 = vector.load %arg2[%c9_64, %c0_65] : memref<16x256xf32, #tpu.memory_space<vmem>>, vector<1x64xf32>
    %151 = arith.addf %149, %150 : vector<1x64xf32>
    %152 = math.tanh %151 : vector<1x64xf32>
    %153 = arith.truncf %152 : vector<1x64xf32> to vector<1x64xbf16>
    %c192_66 = arith.constant 192 : index
    %c0_67 = arith.constant 0 : index
    %154 = vector.load %arg1[%c192_66, %c0_67] : memref<256x256xbf16, #tpu.memory_space<vmem>>, vector<64x64xbf16>
    %cst_68 = arith.constant dense<0.000000e+00> : vector<1x64xf32>
    %155 = tpu.matmul %153, %154, %cst_68 {dimension_numbers = #tpu.dot_dimension_numbers<[1], [0], [0], [1], [0, 0, 1, 1], [], []>} : vector<1x64xbf16>, vector<64x64xbf16>, vector<1x64xf32> -> vector<1x64xf32>
    %c10 = arith.constant 10 : index
    %c0_69 = arith.constant 0 : index
    %156 = vector.load %arg2[%c10, %c0_69] : memref<16x256xf32, #tpu.memory_space<vmem>>, vector<1x64xf32>
    %157 = arith.addf %155, %156 : vector<1x64xf32>
    %158 = math.tanh %157 : vector<1x64xf32>
    %159 = arith.truncf %158 : vector<1x64xf32> to vector<1x64xbf16>
    %c64_70 = arith.constant 64 : index
    %c192_71 = arith.constant 192 : index
    %160 = vector.load %arg1[%c64_70, %c192_71] : memref<256x256xbf16, #tpu.memory_space<vmem>>, vector<64x3xbf16>
    %cst_72 = arith.constant dense<0.000000e+00> : vector<1x3xf32>
    %161 = tpu.matmul %159, %160, %cst_72 {dimension_numbers = #tpu.dot_dimension_numbers<[1], [0], [0], [1], [0, 0, 1, 1], [], []>} : vector<1x64xbf16>, vector<64x3xbf16>, vector<1x3xf32> -> vector<1x3xf32>
    %c11 = arith.constant 11 : index
    %c0_73 = arith.constant 0 : index
    %162 = vector.load %arg2[%c11, %c0_73] : memref<16x256xf32, #tpu.memory_space<vmem>>, vector<1x3xf32>
    %163 = arith.addf %161, %162 : vector<1x3xf32>
    %c0_74 = arith.constant 0 : index
    %c0_75 = arith.constant 0 : index
    %164 = vector.load %arg3[%c0_74, %c0_75] : memref<16x128xf32, #tpu.memory_space<vmem>>, vector<9x64xf32>
    tpu.vector_store %arg3[%c0_74, %c0_75], %60 {strides = array<i32>} : memref<16x128xf32, #tpu.memory_space<vmem>>, vector<9x64xf32>,
    %c9_76 = arith.constant 9 : index
    %c0_77 = arith.constant 0 : index
    %165 = vector.load %arg3[%c9_76, %c0_77] : memref<16x128xf32, #tpu.memory_space<vmem>>, vector<1x3xf32>
    tpu.vector_store %arg3[%c9_76, %c0_77], %163 {strides = array<i32>} : memref<16x128xf32, #tpu.memory_space<vmem>>, vector<1x3xf32>,
    %c10_78 = arith.constant 10 : index
    %c0_79 = arith.constant 0 : index
    %166 = vector.load %arg3[%c10_78, %c0_79] : memref<16x128xf32, #tpu.memory_space<vmem>>, vector<1x32xf32>
    tpu.vector_store %arg3[%c10_78, %c0_79], %141 {strides = array<i32>} : memref<16x128xf32, #tpu.memory_space<vmem>>, vector<1x32xf32>,
    return
  }
}

</mosaic_0001>

<bundles_post_ra>
// kernel: _policy_forward.1
= control target key start
LH: loop header
LB: loop body
LE: loop exit
PB: predicated region body
PF: predicated region fallthrough
CT: control target
= control target key end

     0   :  { %8 = vsyncpa [#allocation3], 0  ;;  %s1059_s15 = smov [#allocation2]   ;;  %s1060_s17 = smov 128   ;;  %s1217_s0 = inlined_call_operand.vmem [shape: f32[16,128], index: 0, kind: input, shape index: {}]   ;;  %s1218_s1 = inlined_call_operand.hbm [shape: bf16[256,256], index: 1, kind: input, shape index: {}]   ;;  %s1219_s2 = inlined_call_operand.vmem [shape: f32[16,256], index: 2, kind: input, shape index: {}]   ;;  %s1220_s3 = inlined_call_operand.vmem [shape: f32[16,128], index: 3, kind: output, shape index: {}]  }
   0x1   :  { %s15_s14 = sshll.u32 %s1218_s1, 4  ;;  %s17_s16 = sshll.u32 %s1059_s15, 4  ;;  %s16_s14 = int_to_ptr.hbm [resolvable:$true] %s15_s14  ;;  %s18_s16 = int_to_ptr.vmem [resolvable:$true] %s17_s16 }
   0x2   :  { %s1061_s18 = smov 8  }
   0x3   :  { %23 = dma.hbm_to_vmem [thread:$0]  %s16_s14, 4096, %s18_s16, [#allocation3], %s1060_s17, %s1060_s17, %s1061_s18  }
   0x4   :  { %1057 = dma.done.wait [#allocation3], 4096  }
   0x5   :  { %1058 = vsyncadd [#allocation3], 4294963200  ;;  %v797_v0 = vld [vmem:[#allocation2 + $0xc0] sm:$0xf]  ;;  %v969_v1 = vld [vmem:[#allocation2 + $0xc4] sm:$0xf0] }
   0x6   :  { %v798_v2 = vor.u32 %v969_v1, %v797_v0  ;;  %s1062_s19 = smov 64   ;;  %v792_v3 = vld [vmem:[#allocation2 + $0xd0] sm:$0xf]  ;;  %v968_v4 = vld [vmem:[#allocation2 + $0xd4] sm:$0xf0]  ;;  %v1091_v6 = vld [vmem:[%s1217_s0] sm:$0xff] }
   0x7   :  { %v793_v5 = vor.u32 %v968_v4, %v792_v3  ;;  %v1096_v7 = vld [vmem:[%s1217_s0 + $0x8] sm:$0x1]  ;;  %vm46_vm0 = vcmask 130048   ;;  %v1105_v10 = vld [vmem:[%s1217_s0 + $0x9] sm:$0x1]  ;;  %vm151_vm1 = vcmask 523264  }
   0x8   :  { %73 = vrot.lane.b32.xlu0 %v798_v2, %s1062_s19  ;;  %v64_v8 = vpack.c.bf16 %v1096_v7, %v1091_v6  ;;  %v1109_v12 = vpack.c.bf16 %v1105_v10, %v1105_v10  ;;  %v827_v13 = vld [vmem:[#allocation2 + $0x30] sm:$0xf]  ;;  %v977_v14 = vld [vmem:[#allocation2 + $0x34] sm:$0xf0]  ;;  %v976_v15 = vld [vmem:[#allocation2 + $0x34] sm:$0xf] }
   0x9   :  { %v828_v16 = vor.u32 %v977_v14, %v827_v13  ;;  %v829_v17 = vld [vmem:[#allocation2 + $0x38] sm:$0xf0]  ;;  %v861_v18 = vld [vmem:[#allocation2 + $0x70] sm:$0xf]  ;;  %v985_v19 = vld [vmem:[#allocation2 + $0x74] sm:$0xf0] }
   0xa   :  { %192 = vrot.lane.b32.xlu1 %v64_v8, %s1062_s19  ;;  %v832_v20 = vor.u32 %v976_v15, %v829_v17  ;;  %v862_v21 = vor.u32 %v985_v19, %v861_v18  ;;  %v984_v22 = vld [vmem:[#allocation2 + $0x74] sm:$0xf]  ;;  %v863_v23 = vld [vmem:[#allocation2 + $0x78] sm:$0xf0]  ;;  %v819_v25 = vld [vmem:[#allocation2 + $0x20] sm:$0xf] }
   0xb   :  { %v866_v24 = vor.u32 %v984_v22, %v863_v23  ;;  %v975_v26 = vld [vmem:[#allocation2 + $0x24] sm:$0xf0]  ;;  %v974_v27 = vld [vmem:[#allocation2 + $0x24] sm:$0xf]  ;;  %v821_v29 = vld [vmem:[#allocation2 + $0x28] sm:$0xf0] }
   0xc   :  { %173 = vmatpush.bf16.msra.mxu3 %v832_v20  ;;  %241 = vmatpush.bf16.msra.mxu0 %v862_v21  ;;  %v820_v28 = vor.u32 %v975_v26, %v819_v25  ;;  %v853_v30 = vld [vmem:[#allocation2 + $0x60] sm:$0xf]  ;;  %v983_v31 = vld [vmem:[#allocation2 + $0x64] sm:$0xf0]  ;;  %v824_v32 = vor.u32 %v974_v27, %v821_v29  ;;  %v982_v34 = vld [vmem:[#allocation2 + $0x64] sm:$0xf] }
   0xd   :  { %v854_v33 = vor.u32 %v983_v31, %v853_v30  ;;  %v855_v35 = vld [vmem:[#allocation2 + $0x68] sm:$0xf0]  ;;  %v811_v37 = vld [vmem:[#allocation2 + $0x10] sm:$0xf]  ;;  %v973_v38 = vld [vmem:[#allocation2 + $0x14] sm:$0xf0] }
   0xe   :  { %v858_v36 = vor.u32 %v982_v34, %v855_v35  ;;  %v972_v39 = vld [vmem:[#allocation2 + $0x14] sm:$0xf]  ;;  %v812_v40 = vor.u32 %v973_v38, %v811_v37  ;;  %v813_v41 = vld [vmem:[#allocation2 + $0x18] sm:$0xf0]  ;;  %v845_v42 = vld [vmem:[#allocation2 + $0x50] sm:$0xf] }
   0xf   :  { %v981_v43 = vld [vmem:[#allocation2 + $0x54] sm:$0xf0]  ;;  %v816_v44 = vor.u32 %v972_v39, %v813_v41  ;;  %v980_v46 = vld [vmem:[#allocation2 + $0x54] sm:$0xf]  ;;  %v847_v47 = vld [vmem:[#allocation2 + $0x58] sm:$0xf0] }
  0x10   :  { %43 = vrot.lane.b32.xlu0 %v793_v5, %s1062_s19  ;;  %174 = vmatpush.bf16.msra.mxu3 %v824_v32  ;;  %v846_v45 = vor.u32 %v981_v43, %v845_v42  ;;  %v850_v48 = vor.u32 %v980_v46, %v847_v47  ;;  %v803_v49 = vld [vmem:[#allocation2] sm:$0xf]  ;;  %v971_v50 = vld [vmem:[#allocation2 + $0x4] sm:$0xf0]  ;;  %v970_v51 = vld [vmem:[#allocation2 + $0x4] sm:$0xf] }
  0x11   :  { %242 = vmatpush.bf16.msra.mxu0 %v854_v33  ;;  %v804_v52 = vor.u32 %v971_v50, %v803_v49  ;;  %v805_v53 = vld [vmem:[#allocation2 + $0x8] sm:$0xf0]  ;;  %v837_v54 = vld [vmem:[#allocation2 + $0x40] sm:$0xf]  ;;  %v979_v55 = vld [vmem:[#allocation2 + $0x44] sm:$0xf0] }
  0x12   :  { %v808_v56 = vor.u32 %v970_v51, %v805_v53  ;;  %v838_v57 = vor.u32 %v979_v55, %v837_v54  ;;  %v978_v58 = vld [vmem:[#allocation2 + $0x44] sm:$0xf]  ;;  %v839_v59 = vld [vmem:[#allocation2 + $0x48] sm:$0xf0]  ;;  %v67_v63 = vld [vmem:[%s1219_s2 + $0x1] ss:$0 sm:$0xff] }
  0x13   :  { %v842_v60 = vor.u32 %v978_v58, %v839_v59  ;;  %v275_v25 = vld [vmem:[%s1219_s2 + $0x3] ss:$0 sm:$0xff]  ;;  %v883_v46 = vld [vmem:[#allocation2 + $0xb0] sm:$0xf]  ;;  %v989_v47 = vld [vmem:[#allocation2 + $0xb4] sm:$0xf0] }
  0x14   :  { %175 = vmatpush.bf16.msra.mxu3 %v816_v44  ;;  %v884_v49 = vor.u32 %v989_v47, %v883_v46  ;;  %v988_v50 = vld [vmem:[#allocation2 + $0xa4] sm:$0xf0]  ;;  %v987_v53 = vld [vmem:[#allocation2 + $0x94] sm:$0xf0]  ;;  %v871_v55 = vld [vmem:[#allocation2 + $0x80] sm:$0xf] }
  0x15   :  { %243 = vmatpush.bf16.msra.mxu0 %v846_v45  ;;  %s1063_s5 = smov 96   ;;  %vm357_vm2 = vcmask 261120   ;;  %vm388_vm4 = vcmask 57344   ;;  %vm775_vm5 = vcmask 516096   ;;  %vm404_vm6 = vcmask 64512  }
  0x16   :  { %v913_v47 = vld [vmem:[#allocation2 + $0xd4] sm:$0xf]  ;;  %vm783_vm8 = vcmask 253952   ;;  %vm777_vm9 = vcmask 16384  }
  0x18   :  { %176 = vmatpush.bf16.msra.mxu3 %v808_v56  ;;  %v986_v56 = vld [vmem:[#allocation2 + $0x84] sm:$0xf0] }
  0x19   :  { %244 = vmatpush.bf16.msra.mxu0 %v838_v57  ;;  %v872_v57 = vor.u32 %v986_v56, %v871_v55  ;;  %v900_v55 = vld [vmem:[#allocation2 + $0xa4] sm:$0xf]  ;;  %v992_v56 = vld [vmem:[#allocation2 + $0xa8] sm:$0xf0] }
  0x7a   :  { %v74_v9 = vpop.permute.xlu0 %73 }
  0x7b   :  { %86 = vmatpush.bf16.msra.mxu1 %v74_v9 }
  0x7c   :  { %v193_v61 = vpop.permute.xlu1 %192 }
  0x7d   :  { %867 = vmatmul.msk.bf16.vlgmr.msra.gmra.mxu0 %vm151_vm1, %v193_v61 }
  0x7e   :  { %799 = vmatmul.msk.bf16.vlgmr.msra.gmra.mxu1 %vm46_vm0, %v64_v8 }
  0x7f   :  { %255 = vmatpush.bf16.msrb.mxu1 %v866_v24 }
  0x82   :  { %v44_v11 = vpop.permute.xlu0 %43 }
  0x83   :  { %57 = vmatpush.bf16.msra.mxu2 %v44_v11  ;;  %256 = vmatpush.bf16.msrb.mxu1 %v858_v36  ;;  %v800_v11 = vld [vmem:[%s1219_s2 + $0x2] ss:$8 sm:$0x3] }
  0x84   :  { %v107_v13 = vperm.slane %v800_v11, 0  ;;  %v108_v29 = vperm.slane %v800_v11, 1 }
  0x86   :  { %794 = vmatmul.msk.bf16.vlgmr.msra.gmra.mxu2 %vm46_vm0, %v1109_v12 }
  0x87   :  { %159 = vmatpush.bf16.msrb.mxu2 %v828_v16  ;;  %257 = vmatpush.bf16.msrb.mxu1 %v850_v48  ;;  %v879_v48 = vld [vmem:[#allocation2 + $0xa0] sm:$0xf] }
  0x88   :  { %v880_v51 = vor.u32 %v988_v50, %v879_v48  ;;  %v995_v48 = vld [vmem:[#allocation2 + $0xd8] sm:$0xf0] }
  0x89   :  { %v914_v50 = vor.u32 %v995_v48, %v913_v47 }
  0x8b   :  { %160 = vmatpush.bf16.msrb.mxu2 %v820_v28  ;;  %258 = vmatpush.bf16.msrb.mxu1 %v842_v60 }
  0x8e   :  { %868 = vmatmul.msk.bf16.vlgmr.msrb.gmra.mxu1 %vm151_vm1, %v193_v61 }
  0x8f   :  { %161 = vmatpush.bf16.msrb.mxu2 %v812_v40 }
  0x93   :  { %162 = vmatpush.bf16.msrb.mxu2 %v804_v52  ;;  %v875_v52 = vld [vmem:[#allocation2 + $0x90] sm:$0xf] }
  0x94   :  { %v876_v54 = vor.u32 %v987_v53, %v875_v52  ;;  %v904_v52 = vld [vmem:[#allocation2 + $0xb4] sm:$0xf]  ;;  %v993_v53 = vld [vmem:[#allocation2 + $0xb8] sm:$0xf0] }
  0x97   :  { %344 = vmatpush.bf16.msra.mxu2 %v884_v49 }
  0x9b   :  { %345 = vmatpush.bf16.msra.mxu2 %v880_v51 }
  0x9f   :  { %346 = vmatpush.bf16.msra.mxu2 %v876_v54 }
  0xa3   :  { %347 = vmatpush.bf16.msra.mxu2 %v872_v57 }
  0xfa   :  { %v246_v14 = vpop.f32.mrf.mxu0 }
  0xfb   :  { %v88_v62 = vpop.f32.mrf.mxu1 }
  0xfc   :  { %v89_v0 = vadd.f32 %v88_v62, %v67_v63 }
  0xfe   :  { %v93_v3 = vmax.f32 %v89_v0, 0.0 }
 0x102   :  { %v248_v21 = vpop.f32.mrf.mxu0 }
 0x103   :  { %v90_v1 = vpop.f32.mrf.mxu1 }
 0x104   :  { %v91_v2 = vadd.f32 %v90_v1, %v67_v63 }
 0x106   :  { %v94_v4 = vmax.f32 %v91_v2, 0.0 }
 0x108   :  { %v95_v5 = vpack.c.bf16 %v94_v4, %v93_v3 }
 0x109   :  { %v1119_v8 = vpop.f32.mrf.mxu2 }
 0x10a   :  { %833 = vmatmul.msk.bf16.vlgmr.msrb.gmra.mxu2 %vm151_vm1, %v95_v5  ;;  %834 = vmatmul.msk.bf16.vlgmr.msra.gmra.mxu3 %vm151_vm1, %v95_v5 }
 0x10b   :  { %v260_v22 = vpop.f32.mrf.mxu1 }
 0x10c   :  { %v276_v30 = vadd.f32 %v275_v25, %v260_v22  ;;  %v552_v22 = vld [vmem:[%s1219_s2 + $0x7] ss:$0 sm:$0xff] }
 0x111   :  { %v61_v9 = vpop.f32.mrf.mxu2 }
 0x112   :  { %v309_v9 = vld [vmem:[%s1219_s2 + $0x4] ss:$0 sm:$0xff] }
 0x113   :  { %v262_v36 = vpop.f32.mrf.mxu1 }
 0x114   :  { %v277_v39 = vadd.f32 %v275_v25, %v262_v36 }
 0x18d   :  { %v164_v15 = vpop.f32.mrf.mxu2  ;;  %v178_v26 = vpop.f32.mrf.mxu3 }
 0x18e   :  { %v165_v16 = vadd.f32 %v164_v15, %v107_v13  ;;  %v179_v32 = vadd.f32 %v178_v26, %v108_v29  ;;  %v931_v26 = vld [vmem:[#allocation2 + $0x14] sm:$0xf] }
 0x190   :  { %v265_v17 = vadd.f32 %v246_v14, %v165_v16  ;;  %v384_v16 = vlaneseq }
 0x192   :  { %v267_v18 = vmul.f32 0.5, %v265_v17  ;;  %v1148_v17 = vand.u32 127, %v384_v16 }
 0x194   :  { %1013 = vtanh.f32 %v267_v18  ;;  %vm386_vm3 = vcmp.lt.s32.totalorder %v1148_v17, 4  ;;  %vm428_vm7 = vcmp.ge.s32.totalorder %v1148_v17, 32 }
 0x195   :  { %v166_v19 = vpop.f32.mrf.mxu2  ;;  %v180_v38 = vpop.f32.mrf.mxu3 }
 0x196   :  { %v167_v20 = vadd.f32 %v166_v19, %v107_v13  ;;  %v181_v41 = vadd.f32 %v180_v38, %v108_v29  ;;  %v961_v29 = vld [vmem:[#allocation2 + $0x64] sm:$0xf] }
 0x198   :  { %v266_v23 = vadd.f32 %v248_v21, %v167_v20 }
 0x19a   :  { %v1014_v24 = vpop.eup %1013  ;;  %v268_v27 = vmul.f32 0.5, %v266_v23  ;;  %v922_v23 = vld [vmem:[#allocation2 + $0x34] sm:$0xf] }
 0x19b   :  { %v271_v28 = vadd.f32 1.0, %v1014_v24  ;;  %v997_v24 = vld [vmem:[#allocation2 + $0x38] sm:$0xf0] }
 0x19c   :  { %1015 = vtanh.f32 %v268_v27  ;;  %v923_v25 = vor.u32 %v997_v24, %v922_v23  ;;  %v999_v27 = vld [vmem:[#allocation2 + $0x18] sm:$0xf0] }
 0x19d   :  { %v273_v31 = vmul.f32 0.5, %v271_v28  ;;  %v932_v28 = vor.u32 %v999_v27, %v931_v26 }
 0x19f   :  { %v278_v33 = vmul.f32 %v276_v30, %v273_v31  ;;  %v284_v61 = vsub.f32 1.0, %v273_v31  ;;  %v296_v0 = vmul.f32 %v273_v31, %v1091_v6  ;;  %v1006_v30 = vld [vmem:[#allocation2 + $0x68] sm:$0xf0] }
 0x1a0   :  { %v962_v31 = vor.u32 %v1006_v30, %v961_v29 }
 0x1a1   :  { %v280_v34 = vadd.f32 %v278_v33, %v179_v32 }
 0x1a2   :  { %v1016_v35 = vpop.eup %1015 }
 0x1a3   :  { %1017 = vtanh.f32 %v280_v34  ;;  %v272_v37 = vadd.f32 1.0, %v1016_v35 }
 0x1a5   :  { %v274_v40 = vmul.f32 0.5, %v272_v37 }
 0x1a7   :  { %v279_v42 = vmul.f32 %v277_v39, %v274_v40  ;;  %v285_v59 = vsub.f32 1.0, %v274_v40  ;;  %v297_v63 = vmul.f32 %v274_v40, %v1096_v7 }
 0x1a9   :  { %v1018_v43 = vpop.eup %1017  ;;  %v281_v44 = vadd.f32 %v279_v42, %v181_v41 }
 0x1aa   :  { %288 = vrot.lane.b32.xlu1 %v1018_v43, %s1062_s19 }
 0x1ab   :  { %1019 = vtanh.f32 %v281_v44 }
 0x1b1   :  { %v1020_v45 = vpop.eup %1019 }
 0x1b2   :  { %290 = vrot.lane.b32.xlu2 %v1020_v45, %s1062_s19 }
 0x20c   :  { %v291_v58 = vpop.permute.xlu2 %290 }
 0x20d   :  { %v295_v60 = vmul.f32 %v291_v58, %v285_v59  ;;  %v901_v58 = vor.u32 %v992_v56, %v900_v55  ;;  %v1003_v55 = vld [vmem:[#allocation2 + $0xf4] sm:$0xf0] }
 0x20f   :  { %v299_v2 = vadd.f32 %v297_v63, %v295_v60  ;;  %v37_v60 = vld [vmem:[%s1219_s2] ss:$0 sm:$0xff] }
 0x21c   :  { %v289_v62 = vpop.permute.xlu1 %288 }
 0x21d   :  { %v294_v1 = vmul.f32 %v289_v62, %v284_v61  ;;  %v60_v61 = vadd.f32 %v1119_v8, %v37_v60 }
 0x21f   :  { %v298_v3 = vadd.f32 %v296_v0, %v294_v1  ;;  %v63_v62 = vmax.f32 %v60_v61, 0.0 }
 0x221   :  { %v300_v4 = vpack.c.bf16 %v299_v2, %v298_v3 }
 0x223   :  { %311 = vrot.lane.b32.xlu2 %v300_v4, %s1062_s19  ;;  %v991_v4 = vld [vmem:[#allocation2 + $0x98] sm:$0xf0] }
 0x27d   :  { %v312_v5 = vpop.permute.xlu2 %311 }
 0x27e   :  { %885 = vmatmul.msk.bf16.vlgmr.msra.gmra.mxu2 %vm151_vm1, %v312_v5 }
 0x301   :  { %v349_v11 = vpop.f32.mrf.mxu2 }
 0x302   :  { %v350_v13 = vadd.f32 %v349_v11, %v309_v9  ;;  %v990_v11 = vld [vmem:[#allocation2 + $0x88] sm:$0xf0] }
 0x304   :  { %355 = vrot.lane.b32.xlu0 %v350_v13, %s1063_s5 }
 0x309   :  { %v351_v6 = vpop.f32.mrf.mxu2 }
 0x30a   :  { %v352_v14 = vadd.f32 %v351_v6, %v309_v9  ;;  %v892_v9 = vld [vmem:[#allocation2 + $0x84] sm:$0xf] }
 0x30b   :  { %v893_v13 = vor.u32 %v990_v11, %v892_v9  ;;  %v965_v11 = vld [vmem:[#allocation2 + $0x74] sm:$0xf] }
 0x30c   :  { %401 = vrot.lane.b32.xlu0 %v298_v3, %s1062_s19  ;;  %v896_v3 = vld [vmem:[#allocation2 + $0x94] sm:$0xf] }
 0x30d   :  { %v897_v5 = vor.u32 %v991_v4, %v896_v3  ;;  %v936_v4 = vld [vmem:[#allocation2 + $0xc0] sm:$0xf] }
 0x314   :  { %439 = vrot.lane.b32.xlu0 %v884_v49, %s1062_s19  ;;  %v909_v49 = vld [vmem:[#allocation2 + $0xc4] sm:$0xf] }
 0x31c   :  { %437 = vrot.lane.b32.xlu0 %v880_v51, %s1062_s19  ;;  %v994_v51 = vld [vmem:[#allocation2 + $0xc8] sm:$0xf0] }
 0x324   :  { %435 = vrot.lane.b32.xlu0 %v876_v54, %s1062_s19  ;;  %v905_v54 = vor.u32 %v993_v53, %v904_v52 }
 0x326   :  { %503 = vmatpush.bf16.msrb.mxu2 %v905_v54  ;;  %v948_v54 = vld [vmem:[#allocation2 + $0xf0] sm:$0xf] }
 0x327   :  { %v949_v56 = vor.u32 %v1003_v55, %v948_v54 }
 0x32a   :  { %504 = vmatpush.bf16.msrb.mxu2 %v901_v58 }
 0x32c   :  { %433 = vrot.lane.b32.xlu0 %v872_v57, %s1062_s19  ;;  %v910_v57 = vor.u32 %v994_v51, %v909_v49 }
 0x32e   :  { %505 = vmatpush.bf16.msrb.mxu2 %v897_v5  ;;  %v1000_v5 = vld [vmem:[#allocation2 + $0xc4] sm:$0xf0] }
 0x32f   :  { %v937_v9 = vor.u32 %v1000_v5, %v936_v4 }
 0x332   :  { %506 = vmatpush.bf16.msrb.mxu2 %v893_v13  ;;  %v1007_v13 = vld [vmem:[#allocation2 + $0x78] sm:$0xf0] }
 0x376   :  { %v356_v7 = vpop.permute.xlu0 %355 }
 0x377   :  { %886 = vmatpush.xpose.msk.msrb.mxu3 %vm357_vm2, %v356_v7 }
 0x37a   :  { %887 = vmatmul.msk.f32.vlgmr.msrb.gmra.mxu3 %vm357_vm2, %v352_v14  ;;  %v432_v14 = vld [vmem:[%s1219_s2 + $0x5] ss:$0 sm:$0xff] }
 0x37b   :  { %540 = vmatpush.bf16.msra.mxu3 %v914_v50 }
 0x37e   :  { %v402_v15 = vpop.permute.xlu0 %401 }
 0x37f   :  { %774 = vst.msk [vmem:[%s1220_s3] sm:$0xff] %vm151_vm1, %v402_v15  ;;  %423 = vmatpush.msrb.mxu0 %v402_v15  ;;  %541 = vmatpush.bf16.msra.mxu3 %v910_v57  ;;  %v586_v57 = vld [vmem:[%s1219_s2 + $0x10] ss:$0 sm:$0xff] }
 0x383   :  { %702 = vmatpush.bf16.msrb.mxu3 %v949_v56 }
 0x386   :  { %v440_v42 = vpop.permute.xlu0 %439 }
 0x387   :  { %452 = vmatpush.bf16.msra.mxu1 %v440_v42  ;;  %v1005_v42 = vld [vmem:[#allocation2 + $0x58] sm:$0xf0] }
 0x38e   :  { %v438_v43 = vpop.permute.xlu0 %437 }
 0x38f   :  { %453 = vmatpush.bf16.msra.mxu1 %v438_v43 }
 0x396   :  { %v436_v44 = vpop.permute.xlu0 %435 }
 0x397   :  { %454 = vmatpush.bf16.msra.mxu1 %v436_v44 }
 0x3fd   :  { %v380_v18 = vpop.f32.mrf.mxu3 }
 0x3fe   :  { %v383_v19 = vmul.f32 0.70710677, %v380_v18 }
 0x400   :  { %v387_v20 = vsel %vm386_vm3, %v383_v19, -1e+30 }
 0x401   :  { %v389_v21 = vsel %vm388_vm4, %v387_v20, -inf }
 0x402   :  { %390 = vmax.xlane.f32.xlu1 %v389_v21 }
 0x41b   :  { %554 = vrot.lane.b32.xlu1 %v552_v22, %s1062_s19 }
 0x423   :  { %602 = vrot.lane.b32.xlu1 %v923_v25, %s1062_s19 }
 0x42b   :  { %640 = vrot.lane.b32.xlu1 %v932_v28, %s1062_s19 }
 0x433   :  { %746 = vrot.lane.b32.xlu1 %v962_v31, %s1062_s19 }
 0x43b   :  { %771 = vrot.lane.b32.xlu1 %v299_v2, %s1062_s19 }
 0x475   :  { %v391_v32 = vpop.xlane.xlu1 %390 }
 0x476   :  { %v392_v33 = vsub.f32 %v387_v20, %v391_v32  ;;  %v471_v20 = vld [vmem:[%s1219_s2 + $0x6] ss:$0 sm:$0xff] }
 0x478   :  { %v393_v34 = vmul.f32 1.442695, %v392_v33 }
 0x47a   :  { %1021 = vpow2.f32 %v393_v34  ;;  %v918_v34 = vld [vmem:[#allocation2 + $0x24] sm:$0xf] }
 0x480   :  { %v1022_v35 = vpop.eup %1021 }
 0x481   :  { %v395_v36 = vsel %vm388_vm4, %v1022_v35, 0.0 }
 0x482   :  { %396 = vadd.xlane.f32.xlu2 %v395_v36 }
 0x48d   :  { %v555_v37 = vpop.permute.xlu1 %554 }
 0x495   :  { %v603_v38 = vpop.permute.xlu1 %602 }
 0x496   :  { %615 = vmatpush.bf16.msra.mxu0 %v603_v38  ;;  %v998_v38 = vld [vmem:[#allocation2 + $0x8] sm:$0xf0] }
 0x49a   :  { %517 = vrot.lane.b32.xlu2 %v1109_v12, %s1062_s19 }
 0x49d   :  { %v641_v39 = vpop.permute.xlu1 %640 }
 0x4a2   :  { %576 = vrot.lane.b32.xlu2 %v1105_v10, %s1063_s5  ;;  %v434_v10 = vpop.permute.xlu0 %433 }
 0x4a3   :  { %455 = vmatpush.bf16.msra.mxu1 %v434_v10 }
 0x4a5   :  { %v1165_v40 = vpop.permute.xlu1 %746 }
 0x4a7   :  { %653 = vmatpush.bf16.msrb.mxu1 %v641_v39 }
 0x4ad   :  { %v772_v41 = vpop.permute.xlu1 %771 }
 0x4ae   :  { %776 = vst.msk [vmem:[%s1220_s3 + $0x8] sm:$0x1] %vm775_vm5, %v772_v41  ;;  %v957_v41 = vld [vmem:[#allocation2 + $0x54] sm:$0xf] }
 0x4af   :  { %v958_v43 = vor.u32 %v1005_v42, %v957_v41 }
 0x4f5   :  { %v397_v45 = vpop.xlane.xlu2 %396 }
 0x4f6   :  { %1023 = vrcp.f32 %v397_v45 }
 0x4fc   :  { %v1024_v12 = vpop.eup %1023 }
 0x4fd   :  { %v399_v46 = vmul.f32 %v1024_v12, %v1022_v35  ;;  %v518_v59 = vpop.permute.xlu2 %517  ;;  %v996_v35 = vld [vmem:[#allocation2 + $0x28] sm:$0xf0] }
 0x4fe   :  { %915 = vmatmul.msk.bf16.vlgmr.msra.gmra.mxu3 %vm357_vm2, %v518_v59  ;;  %v919_v36 = vor.u32 %v996_v35, %v918_v34 }
 0x4ff   :  { %888 = vmatmul.msk.f32.vlgmr.msrb.gmra.mxu0 %vm404_vm6, %v399_v46 }
 0x505   :  { %v577_v44 = vpop.permute.xlu2 %576 }
 0x57c   :  { %v425_v63 = vpop.f32.mrf.mxu0 }
 0x57d   :  { %v429_v0 = vsel %vm428_vm7, %v425_v63, 0.0  ;;  %v1002_v63 = vld [vmem:[#allocation2 + $0xe4] sm:$0xf0] }
 0x57e   :  { %v430_v1 = vadd.f32 %v429_v0, %v63_v62  ;;  %v944_v62 = vld [vmem:[#allocation2 + $0xe0] sm:$0xf] }
 0x57f   :  { %v945_v0 = vor.u32 %v1002_v63, %v944_v62 }
 0x580   :  { %v431_v2 = vpack.c.bf16 %v430_v1, %v430_v1  ;;  %v940_v1 = vld [vmem:[#allocation2 + $0xd0] sm:$0xf] }
 0x581   :  { %v543_v6 = vpop.f32.mrf.mxu3  ;;  %703 = vmatpush.bf16.msrb.mxu3 %v945_v0 }
 0x582   :  { %889 = vmatmul.msk.bf16.vlgmr.msra.gmra.mxu1 %vm151_vm1, %v431_v2  ;;  %v557_v7 = vadd.f32 %v555_v37, %v543_v6  ;;  %v927_v37 = vld [vmem:[#allocation2 + $0x4] sm:$0xf]  ;;  %v1001_v2 = vld [vmem:[#allocation2 + $0xd4] sm:$0xf0] }
 0x583   :  { %v928_v39 = vor.u32 %v998_v38, %v927_v37  ;;  %v941_v3 = vor.u32 %v1001_v2, %v940_v1 }
 0x584   :  { %559 = vrot.lane.b32.xlu0 %v557_v7, %s1062_s19  ;;  %v953_v7 = vld [vmem:[#allocation2 + $0x44] sm:$0xf] }
 0x585   :  { %704 = vmatpush.bf16.msrb.mxu3 %v941_v3 }
 0x589   :  { %v545_v8 = vpop.f32.mrf.mxu3  ;;  %705 = vmatpush.bf16.msrb.mxu3 %v937_v9 }
 0x58a   :  { %v1004_v8 = vld [vmem:[#allocation2 + $0x48] sm:$0xf0] }
 0x5f6   :  { %v560_v28 = vpop.permute.xlu0 %559 }
 0x5ff   :  { %v457_v15 = vpop.f32.mrf.mxu1 }
 0x600   :  { %v458_v16 = vadd.f32 %v457_v15, %v432_v14  ;;  %v954_v14 = vor.u32 %v1004_v8, %v953_v7  ;;  %v627_v15 = vld [vmem:[%s1219_s2 + $0x11] ss:$0 sm:$0xff] }
 0x602   :  { %v461_v17 = vmax.f32 %v458_v16, 0.0 }
 0x604   :  { %v462_v18 = vpack.c.bf16 %v461_v17, %v461_v17 }
 0x606   :  { %906 = vmatmul.msk.bf16.vlgmr.msrb.gmra.mxu2 %vm151_vm1, %v462_v18 }
 0x607   :  { %v459_v19 = vpop.f32.mrf.mxu1 }
 0x689   :  { %v508_v21 = vpop.f32.mrf.mxu2 }
 0x68a   :  { %v509_v22 = vadd.f32 %v508_v21, %v471_v20 }
 0x68c   :  { %v547_v23 = vadd.f32 %v543_v6, %v509_v22  ;;  %v966_v6 = vor.u32 %v1007_v13, %v965_v11 }
 0x68e   :  { %v548_v24 = vmul.f32 0.5, %v547_v23  ;;  %v670_v23 = vld [vmem:[%s1219_s2 + $0x12] ss:$0 sm:$0xff] }
 0x690   :  { %1025 = vtanh.f32 %v548_v24 }
 0x691   :  { %v510_v25 = vpop.f32.mrf.mxu2 }
 0x696   :  { %v1026_v26 = vpop.eup %1025 }
 0x697   :  { %v550_v27 = vadd.f32 1.0, %v1026_v26 }
 0x699   :  { %v551_v29 = vmul.f32 0.5, %v550_v27 }
 0x69b   :  { %v562_v30 = vmul.f32 %v560_v28, %v551_v29  ;;  %v569_v45 = vsub.f32 1.0, %v551_v29  ;;  %v579_v46 = vmul.f32 %v577_v44, %v551_v29  ;;  %v721_v29 = vld [vmem:[%s1219_s2 + $0x13] ss:$0 sm:$0xff] }
 0x69d   :  { %564 = vrot.lane.b32.xlu0 %v562_v30, %s1062_s19 }
 0x70f   :  { %v565_v31 = vpop.permute.xlu0 %564 }
 0x710   :  { %v567_v32 = vadd.f32 %v565_v31, %v509_v22 }
 0x712   :  { %1027 = vtanh.f32 %v567_v32 }
 0x718   :  { %v1028_v33 = vpop.eup %1027 }
 0x719   :  { %571 = vrot.lane.b32.xlu0 %v1028_v33, %s1063_s5 }
 0x721   :  { %600 = vrot.lane.b32.xlu0 %v919_v36, %s1062_s19 }
 0x729   :  { %638 = vrot.lane.b32.xlu0 %v928_v39, %s1062_s19 }
 0x731   :  { %744 = vrot.lane.b32.xlu0 %v958_v43, %s1062_s19 }
 0x78b   :  { %v572_v12 = vpop.permute.xlu0 %571 }
 0x78c   :  { %v574_v10 = vmul.f32 %v572_v12, %v569_v45 }
 0x78e   :  { %v580_v47 = vadd.f32 %v579_v46, %v574_v10 }
 0x790   :  { %780 = vrot.lane.b32.xlu0 %v580_v47, %s1063_s5  ;;  %v581_v48 = vpack.c.bf16 %v580_v47, %v580_v47 }
 0x792   :  { %588 = vrot.lane.b32.xlu2 %v581_v48, %s1063_s5 }
 0x793   :  { %v601_v49 = vpop.permute.xlu0 %600 }
 0x794   :  { %616 = vmatpush.bf16.msra.mxu0 %v601_v49 }
 0x79a   :  { %748 = vrot.lane.b32.xlu2 %v966_v6, %s1062_s19 }
 0x79b   :  { %v639_v50 = vpop.permute.xlu0 %638 }
 0x79c   :  { %654 = vmatpush.bf16.msrb.mxu1 %v639_v50 }
 0x7a2   :  { %742 = vrot.lane.b32.xlu2 %v954_v14, %s1062_s19 }
 0x7a3   :  { %v745_v52 = vpop.permute.xlu0 %744 }
 0x7ec   :  { %v589_v51 = vpop.permute.xlu2 %588 }
 0x7ed   :  { %924 = vmatmul.msk.bf16.vlgmr.msra.gmra.mxu0 %vm357_vm2, %v589_v51 }
 0x7f4   :  { %v749_v21 = vpop.permute.xlu2 %748 }
 0x7f5   :  { %761 = vmatpush.bf16.msrb.mxu0 %v749_v21 }
 0x7f9   :  { %762 = vmatpush.bf16.msrb.mxu0 %v1165_v40 }
 0x7fc   :  { %v743_v22 = vpop.permute.xlu2 %742 }
 0x7fd   :  { %763 = vmatpush.bf16.msrb.mxu0 %v745_v52 }
 0x801   :  { %764 = vmatpush.bf16.msrb.mxu0 %v743_v22 }
 0x802   :  { %v781_v53 = vpop.permute.xlu0 %780 }
 0x803   :  { %784 = vst.msk [vmem:[%s1220_s3 + $0xa] sm:$0x1] %vm783_vm8, %v781_v53 }
 0x86a   :  { %v618_v58 = vpop.f32.mrf.mxu0 }
 0x86b   :  { %v619_v59 = vadd.f32 %v618_v58, %v586_v57 }
 0x86d   :  { %v622_v60 = vpack.c.bf16 %v619_v59, %v619_v59 }
 0x86f   :  { %933 = vmatmul.msk.bf16.vlgmr.msrb.gmra.mxu1 %vm357_vm2, %v622_v60 }
 0x872   :  { %v620_v61 = vpop.f32.mrf.mxu0 }
 0x8ec   :  { %v656_v16 = vpop.f32.mrf.mxu1 }
 0x8ed   :  { %v657_v17 = vadd.f32 %v656_v16, %v627_v15 }
 0x8ef   :  { %1029 = vtanh.f32 %v657_v17 }
 0x8f4   :  { %v658_v18 = vpop.f32.mrf.mxu1 }
 0x8f5   :  { %v1030_v19 = vpop.eup %1029 }
 0x8f6   :  { %v661_v20 = vpack.c.bf16 %v1030_v19, %v1030_v19 }
 0x8f8   :  { %950 = vmatmul.msk.bf16.vlgmr.msrb.gmra.mxu3 %vm151_vm1, %v661_v20 }
 0x97b   :  { %v707_v24 = vpop.f32.mrf.mxu3 }
 0x97c   :  { %v708_v25 = vadd.f32 %v707_v24, %v670_v23 }
 0x97e   :  { %1031 = vtanh.f32 %v708_v25 }
 0x983   :  { %v709_v26 = vpop.f32.mrf.mxu3 }
 0x984   :  { %v1032_v27 = vpop.eup %1031 }
 0x985   :  { %v712_v28 = vpack.c.bf16 %v1032_v27, %v1032_v27 }
 0x987   :  { %967 = vmatmul.msk.bf16.vlgmr.msrb.gmra.mxu0 %vm151_vm1, %v712_v28 }
 0xa04   :  { %v766_v40 = vpop.f32.mrf.mxu0 }
 0xa05   :  { %v767_v30 = vadd.f32 %v766_v40, %v721_v29 }
 0xa07   :  { %778 = vst.msk [vmem:[%s1220_s3 + $0x9] sm:$0x1] %vm777_vm9, %v767_v30 }
 0xa0c   :  { %v768_v31 = vpop.f32.mrf.mxu0 }
 0xa0d   :  { %789 = vsyncpa [#allocation3], 1 }

</bundles_post_ra>
